<compile_context>
chip_gen: v7x
topology: tpu7x:2x2x1
jax: 0.10.0
libtpu: 0.0.40
codegen_flags: <defaults>
</compile_context>

<pallas_src>
import jax
import jax.numpy as jnp
from jax.experimental import pallas as pl
from jax.experimental.pallas import tpu as pltpu

H_PAD = 256   # hidden dim padded 200 -> 256 (clean 2x128 lanes for the 2nd dot)
OUT_PAD = 16  # output slab width (logical output dim is 10)


def mlp_kernel(x_ref, w1_ref, b1_ref, w2_ref, b2_ref, o_ref):
    # x_ref:  (TILE_B, 64)     f32  (cast to bf16 here, hidden under the DMA)
    # w1_ref: (64, H_PAD)      bf16 (cols 200.. are zero)
    # b1_ref: (1, H_PAD)       f32  (lanes 200.. are zero)
    # w2_ref: (H_PAD, OUT_PAD) bf16 (rows 200.. and cols 10.. are zero)
    # b2_ref: (1, OUT_PAD)     f32  (lanes 10.. are -1e30)
    # o_ref:  (TILE_B, OUT_PAD) f32

    x = x_ref[...].astype(jnp.bfloat16)  # in-kernel cast (VPU, pipelined)

    # First linear + ReLU (bf16 MXU matmul, f32 accumulate; f32 epilogue).
    h = jnp.dot(x, w1_ref[...], preferred_element_type=jnp.float32)
    h = jnp.maximum(h + b1_ref[...], 0.0)

    # Second linear (cast only the MXU operand to bf16, keep f32 accumulation).
    logits = jnp.dot(h.astype(jnp.bfloat16), w2_ref[...],
                     preferred_element_type=jnp.float32)
    logits = logits + b2_ref[...]  # padded lanes -> ~-1e30

    # Softmax over the feature axis, numerically stabilized.
    # Padded lanes carry -1e30, so exp() -> 0 and they never affect max/sum.
    m = jnp.max(logits, axis=1, keepdims=True)
    e = jnp.exp(logits - m)
    denom = jnp.sum(e, axis=1, keepdims=True)
    o_ref[...] = (e * pl.reciprocal(denom)).astype(o_ref.dtype)


def _round_up(a, m):
    return (a + m - 1) // m * m


def neural_network_forward(x, w1, b1, w2, b2, *, max_tile_b=4096):
    """x: (B, 64) f32 -> (B, 10) f32 softmax probabilities.

    Weights are stored transposed relative to nn.Linear, i.e. (in, out).
    """
    B, IN = x.shape
    H = w1.shape[1]          # 200
    OUT = w2.shape[1]        # 10

    # --- Pad weights once (small, constant across the grid) ---------------
    w1p = jnp.zeros((IN, H_PAD), jnp.float32).at[:, :H].set(w1)
    b1p = jnp.zeros((1, H_PAD), jnp.float32).at[:, :H].set(b1.reshape(1, H))
    w2p = jnp.zeros((H_PAD, OUT_PAD), jnp.float32).at[:H, :OUT].set(w2)
    b2p = jnp.full((1, OUT_PAD), -1e30, jnp.float32).at[:, :OUT].set(
        b2.reshape(1, OUT))
    w1b = w1p.astype(jnp.bfloat16)
    w2b = w2p.astype(jnp.bfloat16)

    # --- Batch tiling ------------------------------------------------------
    # Number of tiles: big tiles to amortize per-step overhead, but keep the
    # padding waste below one 16-row granule per tile; give v7x's second
    # TensorCore work whenever the batch is big enough.
    n_tiles = max(1, pl.cdiv(B, max_tile_b))
    if n_tiles == 1 and B >= 32:
        n_tiles = 2
    tile_b = _round_up(pl.cdiv(B, n_tiles), 16)
    b_pad = n_tiles * tile_b
    xp = x if b_pad == B else jnp.pad(x, ((0, b_pad - B), (0, 0)))

    out = pl.pallas_call(
        mlp_kernel,
        out_shape=jax.ShapeDtypeStruct((b_pad, OUT_PAD), jnp.float32),
        grid=(n_tiles,),
        in_specs=[
            pl.BlockSpec((tile_b, IN), lambda i: (i, 0)),        # streamed x (f32)
            pl.BlockSpec((IN, H_PAD), lambda i: (0, 0)),         # resident w1
            pl.BlockSpec((1, H_PAD), lambda i: (0, 0)),          # resident b1
            pl.BlockSpec((H_PAD, OUT_PAD), lambda i: (0, 0)),    # resident w2
            pl.BlockSpec((1, OUT_PAD), lambda i: (0, 0)),        # resident b2
        ],
        out_specs=pl.BlockSpec((tile_b, OUT_PAD), lambda i: (i, 0)),
        compiler_params=pltpu.CompilerParams(
            dimension_semantics=("parallel",),
            vmem_limit_bytes=32 * 1024 * 1024),
    )(xp, w1b, b1p, w2b, b2p)

    return out[:B, :OUT]


def init_params(key):
    """Deterministic init mirroring nn.Linear shapes (stored as (in, out))."""
    k1, k2, k3, k4 = jax.random.split(key, 4)
    # PyTorch default: U(-1/sqrt(fan_in), 1/sqrt(fan_in))
    lim1 = 1.0 / jnp.sqrt(64.0)
    lim2 = 1.0 / jnp.sqrt(200.0)
    w1 = jax.random.uniform(k1, (64, 200), jnp.float32, -lim1, lim1)
    b1 = jax.random.uniform(k2, (1, 200), jnp.float32, -lim1, lim1)
    w2 = jax.random.uniform(k3, (200, 10), jnp.float32, -lim2, lim2)
    b2 = jax.random.uniform(k4, (1, 10), jnp.float32, -lim2, lim2)
    return w1, b1, w2, b2


if __name__ == "__main__":
    key = jax.random.PRNGKey(0)
    kx, kp = jax.random.split(key)

    B = 8  # small batch
    x = jax.random.normal(kx, (B, 64), jnp.float32)
    w1, b1, w2, b2 = init_params(kp)

    out = neural_network_forward(x, w1, b1, w2, b2)
    out = jax.block_until_ready(out)

    # Reference check in plain JAX (f32 math); tolerance covers bf16 MXU
    # operands inside the kernel.
    h_ref = jnp.maximum(x @ w1 + b1, 0.0)
    logits_ref = h_ref @ w2 + b2
    ref = jax.nn.softmax(logits_ref, axis=1)
    assert out.shape == (B, 10)
    assert jnp.allclose(out, ref, atol=2e-2, rtol=2e-2)
    assert jnp.allclose(jnp.sum(out, axis=1), 1.0, atol=1e-3)

    print("KERNEL_OK")
</pallas_src>

<mosaic_0001>
module attributes {stable_mosaic.version = 11 : i64} {
  func.func @mlp_kernel(%arg0: i32, %arg1: memref<16x64xf32, #tpu.memory_space<vmem>>, %arg2: memref<64x256xbf16, #tpu.memory_space<vmem>>, %arg3: memref<1x256xf32, #tpu.memory_space<vmem>>, %arg4: memref<256x16xbf16, #tpu.memory_space<vmem>>, %arg5: memref<1x16xf32, #tpu.memory_space<vmem>>, %arg6: memref<16x16xf32, #tpu.memory_space<vmem>>) attributes {dimension_semantics = [#tpu.dimension_semantics<parallel>], iteration_bounds = array<i64: 1>, scalar_prefetch = 0 : i64, scratch_operands = 0 : i64, tpu.core_type = #tpu.core_type<tc>, window_params = [{transform_indices = @transform_0, window_bounds = array<i64: 16, 64>}, {pipeline_mode = #tpu.pipeline_mode<synchronous>, transform_indices = @transform_1, window_bounds = array<i64: 64, 256>}, {pipeline_mode = #tpu.pipeline_mode<synchronous>, transform_indices = @transform_2, window_bounds = array<i64: 1, 256>}, {pipeline_mode = #tpu.pipeline_mode<synchronous>, transform_indices = @transform_3, window_bounds = array<i64: 256, 16>}, {pipeline_mode = #tpu.pipeline_mode<synchronous>, transform_indices = @transform_4, window_bounds = array<i64: 1, 16>}, {transform_indices = @transform_5, window_bounds = array<i64: 16, 16>}]} {
    %c0 = arith.constant 0 : index
    %c0_0 = arith.constant 0 : index
    %0 = vector.load %arg1[%c0, %c0_0] : memref<16x64xf32, #tpu.memory_space<vmem>>, vector<16x64xf32>
    %1 = arith.truncf %0 : vector<16x64xf32> to vector<16x64xbf16>
    %c0_1 = arith.constant 0 : index
    %c0_2 = arith.constant 0 : index
    %2 = vector.load %arg2[%c0_1, %c0_2] : memref<64x256xbf16, #tpu.memory_space<vmem>>, vector<64x256xbf16>
    %cst = arith.constant dense<0.000000e+00> : vector<16x256xf32>
    %3 = tpu.matmul %1, %2, %cst {dimension_numbers = #tpu.dot_dimension_numbers<[1], [0], [0], [1], [0, 0, 1, 1], [], []>} : vector<16x64xbf16>, vector<64x256xbf16>, vector<16x256xf32> -> vector<16x256xf32>
    %c0_3 = arith.constant 0 : index
    %c0_4 = arith.constant 0 : index
    %4 = vector.load %arg3[%c0_3, %c0_4] : memref<1x256xf32, #tpu.memory_space<vmem>>, vector<1x256xf32>
    %5 = vector.broadcast %4 : vector<1x256xf32> to vector<16x256xf32>
    %6 = arith.addf %3, %5 : vector<16x256xf32>
    %cst_5 = arith.constant 0.000000e+00 : f32
    %7 = vector.broadcast %cst_5 : f32 to vector<16x256xf32>
    %8 = arith.maximumf %6, %7 : vector<16x256xf32>
    %9 = arith.truncf %8 : vector<16x256xf32> to vector<16x256xbf16>
    %c0_6 = arith.constant 0 : index
    %c0_7 = arith.constant 0 : index
    %10 = vector.load %arg4[%c0_6, %c0_7] : memref<256x16xbf16, #tpu.memory_space<vmem>>, vector<256x16xbf16>
    %cst_8 = arith.constant dense<0.000000e+00> : vector<16x16xf32>
    %11 = tpu.matmul %9, %10, %cst_8 {dimension_numbers = #tpu.dot_dimension_numbers<[1], [0], [0], [1], [0, 0, 1, 1], [], []>} : vector<16x256xbf16>, vector<256x16xbf16>, vector<16x16xf32> -> vector<16x16xf32>
    %c0_9 = arith.constant 0 : index
    %c0_10 = arith.constant 0 : index
    %12 = vector.load %arg5[%c0_9, %c0_10] : memref<1x16xf32, #tpu.memory_space<vmem>>, vector<1x16xf32>
    %13 = vector.broadcast %12 : vector<1x16xf32> to vector<16x16xf32>
    %14 = arith.addf %11, %13 : vector<16x16xf32>
    %cst_11 = arith.constant dense<0xFF800000> : vector<16xf32>
    %15 = vector.multi_reduction <maximumf>, %14, %cst_11 [1] : vector<16x16xf32> to vector<16xf32>
    %16 = vector.shape_cast %15 : vector<16xf32> to vector<16x1xf32>
    %17 = vector.broadcast %16 : vector<16x1xf32> to vector<16x16xf32>
    %18 = arith.subf %14, %17 : vector<16x16xf32>
    %19 = math.exp %18 : vector<16x16xf32>
    %cst_12 = arith.constant dense<0.000000e+00> : vector<16xf32>
    %20 = vector.multi_reduction <add>, %19, %cst_12 [1] : vector<16x16xf32> to vector<16xf32>
    %21 = vector.shape_cast %20 : vector<16xf32> to vector<16x1xf32>
    %22 = tpu.reciprocal %21 : vector<16x1xf32> -> vector<16x1xf32>
    %23 = vector.broadcast %22 : vector<16x1xf32> to vector<16x16xf32>
    %24 = arith.mulf %19, %23 : vector<16x16xf32>
    %c0_13 = arith.constant 0 : index
    %c0_14 = arith.constant 0 : index
    %25 = vector.load %arg6[%c0_13, %c0_14] : memref<16x16xf32, #tpu.memory_space<vmem>>, vector<16x16xf32>
    tpu.vector_store %arg6[%c0_13, %c0_14], %24 {strides = array<i32>} : memref<16x16xf32, #tpu.memory_space<vmem>>, vector<16x16xf32>,
    return
  }
  func.func @transform_0(%arg0: i32) -> (i32, i32) {
    %c0_i32 = arith.constant 0 : i32
    %c0_i32_0 = arith.constant 0 : i32
    return %arg0, %c0_i32 : i32, i32
  }
  func.func @transform_1(%arg0: i32) -> (i32, i32) {
    %c0_i32 = arith.constant 0 : i32
    %c0_i32_0 = arith.constant 0 : i32
    %c0_i32_1 = arith.constant 0 : i32
    return %c0_i32, %c0_i32_0 : i32, i32
  }
  func.func @transform_2(%arg0: i32) -> (i32, i32) {
    %c0_i32 = arith.constant 0 : i32
    %c0_i32_0 = arith.constant 0 : i32
    %c0_i32_1 = arith.constant 0 : i32
    return %c0_i32, %c0_i32_0 : i32, i32
  }
  func.func @transform_3(%arg0: i32) -> (i32, i32) {
    %c0_i32 = arith.constant 0 : i32
    %c0_i32_0 = arith.constant 0 : i32
    %c0_i32_1 = arith.constant 0 : i32
    return %c0_i32, %c0_i32_0 : i32, i32
  }
  func.func @transform_4(%arg0: i32) -> (i32, i32) {
    %c0_i32 = arith.constant 0 : i32
    %c0_i32_0 = arith.constant 0 : i32
    %c0_i32_1 = arith.constant 0 : i32
    return %c0_i32, %c0_i32_0 : i32, i32
  }
  func.func @transform_5(%arg0: i32) -> (i32, i32) {
    %c0_i32 = arith.constant 0 : i32
    %c0_i32_0 = arith.constant 0 : i32
    return %arg0, %c0_i32 : i32, i32
  }
}

</mosaic_0001>

<bundles_post_ra>
// kernel: tpu_custom_call.1
= control target key start
LH: loop header
LB: loop body
LE: loop exit
PB: predicated region body
PF: predicated region fallthrough
CT: control target
= control target key end

     0   :  { %v467_v2 = vmov 0   ;;  %vm85_vm0 = vcmask 523264   ;;  %s603_s0 = inlined_call_operand.vmem [shape: f32[16,64], index: 0, kind: input, shape index: {}]   ;;  %s604_s1 = inlined_call_operand.vmem [shape: bf16[64,256], index: 1, kind: input, shape index: {}]   ;;  %s605_s2 = inlined_call_operand.vmem [shape: f32[1,256], index: 2, kind: input, shape index: {}]   ;;  %s606_s3 = inlined_call_operand.vmem [shape: bf16[256,16], index: 3, kind: input, shape index: {}]   ;;  %s607_s4 = inlined_call_operand.vmem [shape: f32[1,16], index: 4, kind: input, shape index: {}]   ;;  %s608_s5 = inlined_call_operand.hbm [shape: f32[16,16], index: 5, kind: output, shape index: {}]  }
   0x1   :  { %v407_v0 = vld [vmem:[%s604_s1 + $0x4] ss:$8 sps:$4 sm:$0xff]   ;;  %v409_v1 = vld [vmem:[%s604_s1] ss:$8 sps:$4 sm:$0xff]   ;;  %121 = vmatprep.mubr.bf16.mxu0 %v467_v2  ;;  %v410_v3 = vld [vmem:[%s604_s1 + $0x14] ss:$8 sps:$4 sm:$0xff]  }
   0x2   :  { %89 = vmatprep.subr.bf16.mxu0 %v407_v0  ;;  %v412_v4 = vld [vmem:[%s604_s1 + $0x10] ss:$8 sps:$4 sm:$0xff]   ;;  %v413_v5 = vld [vmem:[%s604_s1 + $0x24] ss:$8 sps:$4 sm:$0xff]   ;;  %v415_v6 = vld [vmem:[%s604_s1 + $0x20] ss:$8 sps:$4 sm:$0xff]  }
   0x3   :  { %90 = vmatpush1.bf16.msra.mxu0 %v409_v1  ;;  %v416_v7 = vld [vmem:[%s604_s1 + $0x34] ss:$8 sps:$4 sm:$0xff]   ;;  %v419_v8 = vld [vmem:[%s606_s3 + $0x40] sm:$0xff]   ;;  %v421_v10 = vld [vmem:[%s606_s3 + $0x48] sm:$0xff]  }
   0x4   :  { %91 = vmatprep.subr.bf16.mxu0 %v410_v3  ;;  %v420_v9 = vld [vmem:[%s606_s3] sm:$0xff]   ;;  %381 = vmatprep.subr.bf16.mxu1 %v419_v8  ;;  %v418_v11 = vld [vmem:[%s604_s1 + $0x30] ss:$8 sps:$4 sm:$0xff]   ;;  %v422_v13 = vld [vmem:[%s606_s3 + $0x8] sm:$0xff]  }
   0x5   :  { %v22_v12 = vld [vmem:[%s603_s0] sm:$0xff]  ;;  %382 = vmatpush3.bf16.msra.mxu1 %v420_v9  ;;  %v423_v14 = vld [vmem:[%s606_s3 + $0x50] sm:$0xff]   ;;  %v23_v15 = vld [vmem:[%s603_s0 + $0x8] sm:$0xff] }
   0x6   :  { %383 = vmatprep.subr.bf16.mxu1 %v421_v10  ;;  %v424_v16 = vld [vmem:[%s606_s3 + $0x10] sm:$0xff]   ;;  %v24_v17 = vpack.c.bf16 %v23_v15, %v22_v12  ;;  %v425_v18 = vld [vmem:[%s606_s3 + $0x58] sm:$0xff]   ;;  %v427_v20 = vld [vmem:[%s606_s3 + $0x60] sm:$0xff]  }
   0x7   :  { %92 = vmatpush1.bf16.msra.mxu0 %v412_v4  ;;  %v426_v19 = vld [vmem:[%s606_s3 + $0x18] sm:$0xff]  }
   0x8   :  { %93 = vmatprep.subr.bf16.mxu0 %v413_v5 }
   0x9   :  { %384 = vmatpush3.bf16.msra.mxu1 %v422_v13 }
   0xa   :  { %385 = vmatprep.subr.bf16.mxu1 %v423_v14 }
   0xb   :  { %94 = vmatpush1.bf16.msra.mxu0 %v415_v6 }
   0xc   :  { %95 = vmatprep.subr.bf16.mxu0 %v416_v7 }
   0xd   :  { %386 = vmatpush3.bf16.msra.mxu1 %v424_v16 }
   0xe   :  { %387 = vmatprep.subr.bf16.mxu1 %v425_v18 }
   0xf   :  { %96 = vmatpush1.bf16.msra.mxu0 %v418_v11 }
  0x12   :  { %363 = vmatmul.mubr.msk.bf16.vlgmr.msra.gmra.mrb[0].mxu0 %vm85_vm0, %v24_v17 }
  0x13   :  { %10 = vsyncpa [#allocation3], 0  ;;  %388 = vmatpush3.bf16.msra.mxu1 %v426_v19  ;;  %v428_v21 = vld [vmem:[%s606_s3 + $0x20] sm:$0xff]   ;;  %v429_v22 = vld [vmem:[%s606_s3 + $0x68] sm:$0xff]   ;;  %v35_v28 = vlaneseq  ;;  %vm314_vm1 = vcmask 130048  }
  0x14   :  { %389 = vmatprep.subr.bf16.mxu1 %v427_v20  ;;  %v430_v23 = vld [vmem:[%s606_s3 + $0x28] sm:$0xff]   ;;  %v431_v24 = vld [vmem:[%s606_s3 + $0x70] sm:$0xff]   ;;  %v433_v26 = vld [vmem:[%s606_s3 + $0x78] sm:$0xff]  }
  0x15   :  { %v432_v25 = vld [vmem:[%s606_s3 + $0x30] sm:$0xff]   ;;  %v434_v27 = vld [vmem:[%s606_s3 + $0x38] sm:$0xff]   ;;  %v36_v29 = vshrl.u32 %v35_v28, 7  ;;  %v33_v31 = vld [vmem:[%s605_s2] sm:$0x3] }
  0x16   :  { %v364_v51 = vld [vmem:[%s607_s4] ss:$0 sm:$0xff]  ;;  %s468_s4 = smov [#allocation2]  }
  0x17   :  { %390 = vmatpush3.bf16.msra.mxu1 %v428_v21  ;;  %v37_v30 = vsub.s32 0, %v36_v29  ;;  %v41_v32 = vsub.s32 1, %v36_v29  ;;  %s344_s20 = sshll.u32 %s468_s4, 4  ;;  %s345_s20 = int_to_ptr.vmem [resolvable:$true] %s344_s20 }
  0x18   :  { %391 = vmatprep.subr.bf16.mxu1 %v429_v22  ;;  %s443_s21 = scalar_lea.vmem %s345_s20, 256  ;;  %p448_p1 = scmp.lt.s32.totalorder %s345_s20, %s345_s20 }
  0x19   :  { %v38_v33 = vrot.slane %v33_v31, %v37_v30  ;;  %v42_v34 = vrot.slane %v33_v31, %v41_v32  ;;  %p444_p0 = scmp.ne.s32.totalorder %s345_s20, %s443_s21  ;;  %p449_p2 = scmp.lt.s32.totalorder %s443_s21, %s443_s21 }
  0x1b   :  { %392 = vmatpush3.bf16.msra.mxu1 %v430_v23  ;;  %p450_p3 = por %p449_p2, %p448_p1 }
  0x1c   :  { %393 = vmatprep.subr.bf16.mxu1 %v431_v24 }
  0x1d   :  { %p451_p4 = pnand %p450_p3, %p444_p0 }
  0x1f   :  { %394 = vmatpush3.bf16.msra.mxu1 %v432_v25 }
  0x20   :  { %395 = vmatprep.subr.bf16.mxu1 %v433_v26 }
  0x23   :  { %396 = vmatpush3.bf16.msra.mxu1 %v434_v27 }
  0xe5   :  { %v123_v35 = vpop.f32.mrb[0].mxu0 }
  0xe6   :  { %v124_v36 = vadd.f32 %v123_v35, %v38_v33  ;;  %v125_v37 = vpop.f32.mrb[1].mxu0 }
  0xe7   :  { %v126_v38 = vadd.f32 %v125_v37, %v42_v34  ;;  %v127_v39 = vpop.f32.mrb[2].mxu0 }
  0xe8   :  { %v128_v40 = vadd.f32 %v127_v39, %v38_v33  ;;  %v129_v41 = vpop.f32.mrb[3].mxu0  ;;  %v132_v43 = vmax.f32 %v124_v36, 0.0 }
  0xe9   :  { %v130_v42 = vadd.f32 %v129_v41, %v42_v34  ;;  %v133_v45 = vmax.f32 %v126_v38, 0.0 }
  0xea   :  { %v134_v44 = vmax.f32 %v128_v40, 0.0 }
  0xeb   :  { %v135_v46 = vmax.f32 %v130_v42, 0.0 }
  0xec   :  { %v136_v47 = vpack.c.bf16 %v134_v44, %v132_v43 }
  0xed   :  { %v137_v48 = vpack.c.bf16 %v135_v46, %v133_v45 }
  0xef   :  { %305 = vmatprep.mubr.bf16.mxu1 %v137_v48 }
  0xf0   :  { %306 = vmatmul.mubr.bf16.vlgmr.msra.gmra.mrb[0].mxu1 %v136_v47 }
 0x1c3   :  { %v397_v49 = vpop.f32.mrb[0].mxu1 }
 0x1c4   :  { %v398_v50 = vpop.f32.mrb[1].mxu1 }
 0x1c5   :  { %v399_v52 = vadd.f32 %v398_v50, %v397_v49  ;;  %v400_v53 = vpop.f32.mrb[2].mxu1 }
 0x1c6   :  { %v401_v54 = vpop.f32.mrb[3].mxu1 }
 0x1c7   :  { %v402_v55 = vadd.f32 %v401_v54, %v400_v53  ;;  %v308_v56 = vadd.f32 %v399_v52, %v364_v51 }
 0x1c9   :  { %v315_v57 = vsel %vm314_vm1, %v308_v56, -inf  ;;  %v311_v58 = vadd.f32 %v402_v55, %v364_v51 }
 0x1ca   :  { %316 = vmax.xlane.f32.xlu0 %v315_v57 }
 0x1cb   :  { %v318_v59 = vsel %vm314_vm1, %v311_v58, -inf }
 0x1ce   :  { %319 = vmax.xlane.f32.xlu0 %v318_v59 }
 0x257   :  { %v317_v60 = vpop.xlane.xlu0 %316 }
 0x258   :  { %v321_v61 = vsub.f32 %v308_v56, %v317_v60 }
 0x25a   :  { %v323_v62 = vmul.f32 1.442695, %v321_v61 }
 0x25b   :  { %v320_v63 = vpop.xlane.xlu0 %319 }
 0x25c   :  { %435 = vpow2.f32 %v323_v62  ;;  %v322_v0 = vsub.f32 %v311_v58, %v320_v63 }
 0x25e   :  { %v325_v1 = vmul.f32 1.442695, %v322_v0 }
 0x260   :  { %437 = vpow2.f32 %v325_v1 }
 0x266   :  { %v436_v2 = vpop.eup %435 }
 0x267   :  { %v327_v3 = vsel %vm314_vm1, %v436_v2, 0.0 }
 0x268   :  { %328 = vadd.xlane.f32.xlu1 %v327_v3 }
 0x26a   :  { %v438_v4 = vpop.eup %437 }
 0x26b   :  { %v330_v5 = vsel %vm314_vm1, %v438_v4, 0.0 }
 0x26c   :  { %331 = vadd.xlane.f32.xlu1 %v330_v5 }
 0x2f5   :  { %v329_v6 = vpop.xlane.xlu1 %328 }
 0x2f6   :  { %439 = vrcp.f32 %v329_v6 }
 0x2f9   :  { %v332_v7 = vpop.xlane.xlu1 %331 }
 0x2fa   :  { %441 = vrcp.f32 %v332_v7 }
 0x300   :  { %v440_v8 = vpop.eup %439 }
 0x301   :  { %v335_v9 = vmul.f32 %v440_v8, %v436_v2 }
 0x303   :  { %337 = vst.msk [vmem:[#allocation2] sm:$0xff] %vm314_vm1, %v335_v9 }
 0x304   :  { %v442_v10 = vpop.eup %441 }
 0x305   :  { %v336_v11 = vmul.f32 %v442_v10, %v438_v4 }
 0x307   :  { %338 = vst.msk [vmem:[#allocation2 + $0x8] sm:$0xff] %vm314_vm1, %v336_v11 }
 0x308   :  { %454 = shalt.err (!%p451_p4)
}
 0x309   :  { %s455_s23 = scalar_lea.hbm %s608_s5, 256 }
 0x30a   :  { %p456_p5 = scmp.ne.s32.totalorder %s608_s5, %s455_s23  ;;  %p459_p6 = scmp.lt.u32.totalorder %s455_s23, %s608_s5 }
 0x30c   :  { %p461_p7 = pnand %p459_p6, %p456_p5 }
 0x30e   :  { %464 = shalt.err (!%p461_p7)
}
 0x30f   :  { %s469_s0 = smov 128   ;;  %s470_s28 = smov 8  }
 0x310   :  { %350 = dma.vmem_to_hbm [thread:$0]  %s345_s20, 256, %s608_s5, [#allocation3], %s469_s0, %s469_s0, %s470_s28  }
 0x311   :  { %465 = dma.done.wait [#allocation3], 256  }
 0x312   :  { %466 = vsyncadd [#allocation3], 4294967040 }
 0x313   :  { %354 = vsyncpa [#allocation3], 1 }

</bundles_post_ra>
